<compile_context>
chip_gen: v7x
topology: tpu7x:2x2x1
jax: 0.10.0
libtpu: 0.0.40
codegen_flags: <defaults>
</compile_context>

<pallas_src>
import functools

import jax
import jax.numpy as jnp
from jax import lax
from jax.experimental import pallas as pl
from jax.experimental.pallas import tpu as pltpu

MARGIN = 1.0
EPS = 1e-9


def _contrastive_loss_kernel(o1_ref, o2_ref, t_ref, loss_ref):
    # Cast to f32 *inside* the kernel (inputs may arrive as bf16).
    a = o1_ref[...].astype(jnp.float32)          # (TB, D)
    b = o2_ref[...].astype(jnp.float32)          # (TB, D)
    t = t_ref[...]                               # (TB, 1) f32

    # Per-row reductions along the lane axis.
    num = jnp.sum(a * b, axis=-1, keepdims=True)   # (TB, 1)
    sa = jnp.sum(a * a, axis=-1, keepdims=True)
    sb = jnp.sum(b * b, axis=-1, keepdims=True)

    # cos = num / (||a|| * ||b||) via a single EUP rsqrt (no sqrt/divide on VPU).
    cos = num * lax.rsqrt(sa * sb)
    # dist = 1 - 0.5*(1+cos) = 0.5*(1-cos); clamp so rounding can't make it < 0.
    dist = jnp.maximum(0.5 * (1.0 - cos), 0.0)

    hinge = jnp.maximum(MARGIN - jnp.sqrt(dist + EPS), 0.0)
    loss_ref[...] = 0.5 * (t * dist + (1.0 - t) * hinge * hinge)


def _choose_block_rows(B, D, itemsize, tile_bytes=2 << 20, max_rows=1024):
    """Pick a batch tile: ~2 MiB per input tile, multiple of 8, capped at B."""
    rows = tile_bytes // max(1, D * itemsize)
    rows = max(8, (rows // 8) * 8)
    rows = min(rows, max_rows)
    b_pad = ((B + 7) // 8) * 8
    return max(8, min(rows, b_pad))


def contrastive_loss(output1, output2, target, size_average=True, block_rows=None):
    """output1, output2: (B, D) float32/bfloat16; target: (B,) 0/1 int or float."""
    assert output1.shape == output2.shape
    B, D = output1.shape

    if block_rows is None:
        block_rows = _choose_block_rows(B, D, jnp.dtype(output1.dtype).itemsize)
    TB = block_rows
    grid = (pl.cdiv(B, TB),)

    # Target is tiny (B*4 bytes); keep it as a (B, 1) f32 VMEM column.
    t2d = target.astype(jnp.float32).reshape(B, 1)

    losses = pl.pallas_call(
        _contrastive_loss_kernel,
        out_shape=jax.ShapeDtypeStruct((B, 1), jnp.float32),
        grid=grid,
        in_specs=[
            pl.BlockSpec((TB, D), lambda i: (i, 0)),
            pl.BlockSpec((TB, D), lambda i: (i, 0)),
            pl.BlockSpec((TB, 1), lambda i: (i, 0)),
        ],
        out_specs=pl.BlockSpec((TB, 1), lambda i: (i, 0)),
        compiler_params=pltpu.CompilerParams(
            dimension_semantics=("parallel",),
        ),
    )(output1, output2, t2d)

    if size_average:
        return jnp.mean(losses)
    return jnp.sum(losses)


def _reference_loss(o1, o2, target, size_average=True):
    a = o1.astype(jnp.float32)
    b = o2.astype(jnp.float32)
    num = jnp.sum(a * b, axis=-1)
    denom = jnp.linalg.norm(a, axis=-1) * jnp.linalg.norm(b, axis=-1)
    dist = 1.0 - 0.5 * (1.0 + num / denom)
    tf = target.astype(jnp.float32)
    per_row = 0.5 * (
        tf * dist
        + (1.0 - tf) * jnp.maximum(MARGIN - jnp.sqrt(jnp.maximum(dist, 0.0) + EPS), 0.0) ** 2
    )
    return jnp.mean(per_row) if size_average else jnp.sum(per_row)


if __name__ == "__main__":
    key = jax.random.PRNGKey(0)

    # --- case 1: small, single tile ---------------------------------------
    k1, k2, k3, k4, k5, k6 = jax.random.split(key, 6)
    B1, D1 = 8, 128
    o1a = jax.random.normal(k1, (B1, D1), dtype=jnp.float32)
    o2a = jax.random.normal(k2, (B1, D1), dtype=jnp.float32)
    ta = jax.random.bernoulli(k3, 0.5, (B1,)).astype(jnp.int32)

    loss_a = contrastive_loss(o1a, o2a, ta, size_average=True)
    jax.block_until_ready(loss_a)
    ref_a = _reference_loss(o1a, o2a, ta, size_average=True)
    assert jnp.allclose(loss_a, ref_a, rtol=1e-5, atol=1e-6), (loss_a, ref_a)

    # --- case 2: multi-tile grid with ragged tail (B=40, TB=16 -> 3 tiles) --
    B2, D2 = 40, 128
    o1b = jax.random.normal(k4, (B2, D2), dtype=jnp.float32)
    o2b = jax.random.normal(k5, (B2, D2), dtype=jnp.float32)
    tb = jax.random.bernoulli(k6, 0.5, (B2,)).astype(jnp.int32)

    loss_b = contrastive_loss(o1b, o2b, tb, size_average=True, block_rows=16)
    jax.block_until_ready(loss_b)
    ref_b = _reference_loss(o1b, o2b, tb, size_average=True)
    assert jnp.allclose(loss_b, ref_b, rtol=1e-5, atol=1e-6), (loss_b, ref_b)

    # sum variant uses the true (unpadded) row count by construction
    loss_sum = contrastive_loss(o1b, o2b, tb, size_average=False, block_rows=16)
    jax.block_until_ready(loss_sum)
    ref_sum = _reference_loss(o1b, o2b, tb, size_average=False)
    assert jnp.allclose(loss_sum, ref_sum, rtol=1e-5, atol=1e-5), (loss_sum, ref_sum)

    print("KERNEL_OK")
</pallas_src>

<mosaic_0001>
module attributes {stable_mosaic.version = 11 : i64} {
  func.func @_contrastive_loss_kernel(%arg0: i32, %arg1: memref<8x128xf32, #tpu.memory_space<vmem>>, %arg2: memref<8x128xf32, #tpu.memory_space<vmem>>, %arg3: memref<8x1xf32, #tpu.memory_space<vmem>>, %arg4: memref<8x1xf32, #tpu.memory_space<vmem>>) attributes {dimension_semantics = [#tpu.dimension_semantics<parallel>], iteration_bounds = array<i64: 1>, scalar_prefetch = 0 : i64, scratch_operands = 0 : i64, tpu.core_type = #tpu.core_type<tc>, window_params = [{transform_indices = @transform_0, window_bounds = array<i64: 8, 128>}, {transform_indices = @transform_1, window_bounds = array<i64: 8, 128>}, {transform_indices = @transform_2, window_bounds = array<i64: 8, 1>}, {transform_indices = @transform_3, window_bounds = array<i64: 8, 1>}]} {
    %c0 = arith.constant 0 : index
    %c0_0 = arith.constant 0 : index
    %0 = vector.load %arg1[%c0, %c0_0] : memref<8x128xf32, #tpu.memory_space<vmem>>, vector<8x128xf32>
    %c0_1 = arith.constant 0 : index
    %c0_2 = arith.constant 0 : index
    %1 = vector.load %arg2[%c0_1, %c0_2] : memref<8x128xf32, #tpu.memory_space<vmem>>, vector<8x128xf32>
    %c0_3 = arith.constant 0 : index
    %c0_4 = arith.constant 0 : index
    %2 = vector.load %arg3[%c0_3, %c0_4] : memref<8x1xf32, #tpu.memory_space<vmem>>, vector<8x1xf32>
    %3 = arith.mulf %0, %1 : vector<8x128xf32>
    %cst = arith.constant dense<0.000000e+00> : vector<8xf32>
    %4 = vector.multi_reduction <add>, %3, %cst [1] : vector<8x128xf32> to vector<8xf32>
    %5 = vector.shape_cast %4 : vector<8xf32> to vector<8x1xf32>
    %6 = arith.mulf %0, %0 : vector<8x128xf32>
    %cst_5 = arith.constant dense<0.000000e+00> : vector<8xf32>
    %7 = vector.multi_reduction <add>, %6, %cst_5 [1] : vector<8x128xf32> to vector<8xf32>
    %8 = vector.shape_cast %7 : vector<8xf32> to vector<8x1xf32>
    %9 = arith.mulf %1, %1 : vector<8x128xf32>
    %cst_6 = arith.constant dense<0.000000e+00> : vector<8xf32>
    %10 = vector.multi_reduction <add>, %9, %cst_6 [1] : vector<8x128xf32> to vector<8xf32>
    %11 = vector.shape_cast %10 : vector<8xf32> to vector<8x1xf32>
    %12 = arith.mulf %8, %11 : vector<8x1xf32>
    %13 = math.rsqrt %12 : vector<8x1xf32>
    %14 = arith.mulf %5, %13 : vector<8x1xf32>
    %cst_7 = arith.constant 1.000000e+00 : f32
    %15 = vector.broadcast %cst_7 : f32 to vector<8x1xf32>
    %16 = arith.subf %15, %14 : vector<8x1xf32>
    %cst_8 = arith.constant 5.000000e-01 : f32
    %17 = vector.broadcast %cst_8 : f32 to vector<8x1xf32>
    %18 = arith.mulf %17, %16 : vector<8x1xf32>
    %cst_9 = arith.constant 0.000000e+00 : f32
    %19 = vector.broadcast %cst_9 : f32 to vector<8x1xf32>
    %20 = arith.maximumf %18, %19 : vector<8x1xf32>
    %cst_10 = arith.constant 9.99999971E-10 : f32
    %21 = vector.broadcast %cst_10 : f32 to vector<8x1xf32>
    %22 = arith.addf %20, %21 : vector<8x1xf32>
    %23 = math.sqrt %22 : vector<8x1xf32>
    %cst_11 = arith.constant 1.000000e+00 : f32
    %24 = vector.broadcast %cst_11 : f32 to vector<8x1xf32>
    %25 = arith.subf %24, %23 : vector<8x1xf32>
    %cst_12 = arith.constant 0.000000e+00 : f32
    %26 = vector.broadcast %cst_12 : f32 to vector<8x1xf32>
    %27 = arith.maximumf %25, %26 : vector<8x1xf32>
    %28 = arith.mulf %2, %20 : vector<8x1xf32>
    %cst_13 = arith.constant 1.000000e+00 : f32
    %29 = vector.broadcast %cst_13 : f32 to vector<8x1xf32>
    %30 = arith.subf %29, %2 : vector<8x1xf32>
    %31 = arith.mulf %30, %27 : vector<8x1xf32>
    %32 = arith.mulf %31, %27 : vector<8x1xf32>
    %33 = arith.addf %28, %32 : vector<8x1xf32>
    %cst_14 = arith.constant 5.000000e-01 : f32
    %34 = vector.broadcast %cst_14 : f32 to vector<8x1xf32>
    %35 = arith.mulf %34, %33 : vector<8x1xf32>
    %c0_15 = arith.constant 0 : index
    %c0_16 = arith.constant 0 : index
    %36 = vector.load %arg4[%c0_15, %c0_16] : memref<8x1xf32, #tpu.memory_space<vmem>>, vector<8x1xf32>
    tpu.vector_store %arg4[%c0_15, %c0_16], %35 {strides = array<i32>} : memref<8x1xf32, #tpu.memory_space<vmem>>, vector<8x1xf32>,
    return
  }
  func.func @transform_0(%arg0: i32) -> (i32, i32) {
    %c0_i32 = arith.constant 0 : i32
    %c0_i32_0 = arith.constant 0 : i32
    return %arg0, %c0_i32 : i32, i32
  }
  func.func @transform_1(%arg0: i32) -> (i32, i32) {
    %c0_i32 = arith.constant 0 : i32
    %c0_i32_0 = arith.constant 0 : i32
    return %arg0, %c0_i32 : i32, i32
  }
  func.func @transform_2(%arg0: i32) -> (i32, i32) {
    %c0_i32 = arith.constant 0 : i32
    %c0_i32_0 = arith.constant 0 : i32
    return %arg0, %c0_i32 : i32, i32
  }
  func.func @transform_3(%arg0: i32) -> (i32, i32) {
    %c0_i32 = arith.constant 0 : i32
    %c0_i32_0 = arith.constant 0 : i32
    return %arg0, %c0_i32 : i32, i32
  }
}

</mosaic_0001>

<bundles_post_ra>
// kernel: tpu_custom_call.1
= control target key start
LH: loop header
LB: loop body
LE: loop exit
PB: predicated region body
PF: predicated region fallthrough
CT: control target
= control target key end

     0   :  { %8 = vsyncpa [#allocation3], 0  ;;  %s96_s12 = smov [#allocation2]   ;;  %s138_s0 = inlined_call_operand.vmem [shape: f32[8,128], index: 0, kind: input, shape index: {}]   ;;  %s139_s1 = inlined_call_operand.hbm [shape: f32[8,128], index: 1, kind: input, shape index: {}]   ;;  %s140_s2 = inlined_call_operand.vmem [shape: f32[8,1], index: 2, kind: input, shape index: {}]   ;;  %s141_s3 = inlined_call_operand.vmem [shape: f32[8,1], index: 3, kind: output, shape index: {}]  }
   0x1   :  { %s17_s13 = sshll.u32 %s96_s12, 4  ;;  %s72_s16 = scalar_lea.hbm %s139_s1, 128  ;;  %s18_s13 = int_to_ptr.vmem [resolvable:$true] %s17_s13 }
   0x2   :  { %p73_p0 = scmp.ne.s32.totalorder %s139_s1, %s72_s16  ;;  %p76_p1 = scmp.lt.u32.totalorder %s72_s16, %s139_s1 }
   0x4   :  { %p78_p2 = pnand %p76_p1, %p73_p0 }
   0x6   :  { %81 = shalt.err (!%p78_p2)
}
   0x7   :  { %s82_s21 = scalar_lea.vmem %s18_s13, 128  ;;  %p87_p4 = scmp.lt.s32.totalorder %s18_s13, %s18_s13 }
   0x8   :  { %p83_p3 = scmp.ne.s32.totalorder %s18_s13, %s82_s21  ;;  %p88_p5 = scmp.lt.s32.totalorder %s82_s21, %s82_s21 }
   0xa   :  { %p89_p6 = por %p88_p5, %p87_p4 }
   0xc   :  { %p90_p7 = pnand %p89_p6, %p83_p3 }
   0xe   :  { %93 = shalt.err (!%p90_p7)
}
   0xf   :  { %20 = dma.hbm_to_vmem [thread:$0]  %s139_s1, 128, %s18_s13, [#allocation3]  }
  0x10   :  { %94 = dma.done.wait [#allocation3], 128  }
  0x11   :  { %95 = vsyncadd [#allocation3], 4294967168  ;;  %v26_v0 = vld [vmem:[%s138_s0] sm:$0xff]  ;;  %vm60_vm2 = vcmask 7168  }
  0x12   :  { %v27_v1 = vld [vmem:[#allocation2] sm:$0xff]  ;;  %v32_v2 = vmul.f32 %v26_v0, %v26_v0 }
  0x13   :  { %v29_v3 = vmul.f32 %v27_v1, %v26_v0  ;;  %v35_v4 = vmul.f32 %v27_v1, %v27_v1  ;;  %v28_v19 = vld [vmem:[%s140_s2] sm:$0xff] }
  0x14   :  { %33 = vadd.xlane.f32.xlu0 %v32_v2  ;;  %v55_v21 = vsub.f32 1.0, %v28_v19 }
  0x15   :  { %30 = vadd.xlane.f32.xlu1 %v29_v3 }
  0x18   :  { %36 = vadd.xlane.f32.xlu0 %v35_v4 }
  0xa1   :  { %v34_v5 = vpop.xlane.xlu0 %33 }
  0xa2   :  { %v31_v8 = vpop.xlane.xlu1 %30 }
  0xa5   :  { %v37_v6 = vpop.xlane.xlu0 %36 }
  0xa6   :  { %v38_v7 = vmul.f32 %v37_v6, %v34_v5 }
  0xa8   :  { %68 = vrsqrt.f32 %v38_v7 }
  0xb2   :  { %v69_v9 = vpop.eup %68 }
  0xb3   :  { %v40_v10 = vmul.f32 %v69_v9, %v31_v8 }
  0xb5   :  { %v41_v11 = vsub.f32 1.0, %v40_v10 }
  0xb7   :  { %v42_v12 = vmul.f32 0.5, %v41_v11 }
  0xb9   :  { %v43_v13 = vmax.f32 %v42_v12, 0.0 }
  0xbb   :  { %v44_v14 = vadd.f32 1e-09, %v43_v13  ;;  %v54_v25 = vmul.f32 %v43_v13, %v28_v19 }
  0xbd   :  { %70 = vrsqrt.f32 %v44_v14  ;;  %vm47_vm0 = vcmp.eq.f32.partialorder %v44_v14, inf  ;;  %v50_v17 = vand.u32 2147483648, %v44_v14  ;;  %vm49_vm1 = vcmp.eq.f32.partialorder %v44_v14, 0.0 }
  0xc7   :  { %v71_v15 = vpop.eup %70 }
  0xc8   :  { %v46_v16 = vmul.f32 %v71_v15, %v44_v14 }
  0xca   :  { %v48_v18 = vsel %vm47_vm0, %v44_v14, %v46_v16 }
  0xcb   :  { %v51_v20 = vsel %vm49_vm1, %v50_v17, %v48_v18 }
  0xcc   :  { %v52_v22 = vsub.f32 1.0, %v51_v20 }
  0xce   :  { %v53_v23 = vmax.f32 %v52_v22, 0.0 }
  0xd0   :  { %v56_v24 = vmul.f32 %v55_v21, %v53_v23 }
  0xd2   :  { %v57_v26 = vmul.f32 %v56_v24, %v53_v23 }
  0xd4   :  { %v58_v27 = vadd.f32 %v57_v26, %v54_v25 }
  0xd6   :  { %v59_v28 = vmul.f32 0.5, %v58_v27 }
  0xd8   :  { %61 = vst.msk [vmem:[%s141_s3] sm:$0xff] %vm60_vm2, %v59_v28 }
  0xd9   :  { %66 = vsyncpa [#allocation3], 1 }

</bundles_post_ra>
